<compile_context>
chip_gen: v7x
topology: tpu7x:2x2x1
jax: 0.10.0
libtpu: 0.0.40
codegen_flags: <defaults>
</compile_context>

<pallas_src>
import jax
import jax.numpy as jnp
from jax.experimental import pallas as pl
from jax.experimental.pallas import tpu as pltpu

H = 128       # lane-dense padded width for every hidden layer
LANES = 128   # TPU lane count; output batch tiles are multiples of this


def _round_up(x, m):
    return ((x + m - 1) // m) * m


def _choose_tm(batch, tm_max=2048, tm_min=128):
    """Pick the batch tile (rows per grid step).

    * Large tm (<= tm_max) amortizes the ~0.35 us per-grid-step overhead.
    * >= 2 grid steps whenever batch > tm_min, so the "parallel" batch axis can
      shard across v7x's two TensorCores (one extra tiny step on v5e/v6e is noise).
    * Multiples of 128 because the batch dim lies on lanes in the output slab;
      tiny batches use a single full-array block instead (no padding/overrun).
    """
    if batch <= tm_min:
        return batch
    steps = max(pl.cdiv(batch, tm_max), 2)
    return min(tm_max, _round_up(pl.cdiv(batch, steps), tm_min))


def make_mlp_kernel(num_mid, use_bf16):
    """Kernel for a Linear->ReLU chain: 1 input layer, num_mid middle layers,
    1 output layer.  Hidden widths are zero-padded to H lanes (padded lanes stay
    exactly zero through the ReLU chain); the output layer is computed transposed
    so the store is the minimal (out_pad, tm) slab."""
    cdt = jnp.bfloat16 if use_bf16 else jnp.float32

    def kernel(x_ref, w1_ref, wmid_ref, bh_ref, wlast_ref, blast_ref, out_ref):
        # Layer 1: (tm, in_dim) @ (in_dim, H) on the MXU, f32 accumulation.
        h = jnp.dot(x_ref[...].astype(cdt), w1_ref[...],
                    preferred_element_type=jnp.float32)
        h = jnp.maximum(h + bh_ref[0:1, :], 0.0)            # bias + ReLU in f32

        for l in range(num_mid):                             # statically unrolled
            h = jnp.dot(h.astype(cdt), wmid_ref[l],
                        preferred_element_type=jnp.float32)
            h = jnp.maximum(h + bh_ref[l + 1:l + 2, :], 0.0)

        # Output layer, transposed: contract the feature axis of both operands,
        # (out_pad, H) x (tm, H) -> (out_pad, tm).  Writeback is ~out_dim real
        # values per batch row instead of a 128-wide padded row.
        out_t = jax.lax.dot_general(
            wlast_ref[...], h.astype(cdt),
            dimension_numbers=(((1,), (1,)), ((), ())),
            preferred_element_type=jnp.float32)
        out_ref[...] = (out_t + blast_ref[...]).astype(out_ref.dtype)

    return kernel


def pack_params(params, use_bf16=False):
    """Pad/pack ((in, out) weight, (1, out) bias) pairs into lane-dense kernel
    operands.  Zero padding keeps padded lanes exactly zero through the whole
    network, so the unpadded slice of the output equals the original math."""
    n = len(params)
    assert n >= 2, "MLP_Dict kernel expects at least one hidden layer"
    in_dim = params[0][0].shape[0]
    out_dim = params[-1][0].shape[1]
    hidden_widths = [w.shape[1] for (w, _) in params[:-1]]
    assert all(hw <= H for hw in hidden_widths), (
        f"hidden widths must be <= {H}; got {hidden_widths}")
    out_pad = max(8, _round_up(out_dim, 8))
    wdt = jnp.bfloat16 if use_bf16 else jnp.float32

    # First weight: real in_dim rows, output width padded to H lanes.
    w1, _ = params[0]
    w1p = jnp.zeros((in_dim, H), wdt).at[:, : w1.shape[1]].set(w1.astype(wdt))

    # Middle weights (all but first and last): pad to (H, H) and stack.
    num_mid = n - 2
    if num_mid > 0:
        wmid = jnp.stack([
            jnp.zeros((H, H), wdt).at[: w.shape[0], : w.shape[1]].set(w.astype(wdt))
            for (w, _) in params[1:-1]])
    else:
        wmid = jnp.zeros((1, H, H), wdt)                    # dummy, never read

    # Hidden biases (layers 1..n-1): one (n-1, H) f32 slab.
    b_hidden = jnp.stack([
        jnp.zeros((H,), jnp.float32).at[: b.shape[-1]].set(
            b.reshape(-1).astype(jnp.float32))
        for (_, b) in params[:-1]])

    # Last layer: weight stored TRANSPOSED & padded to (out_pad, H); bias (out_pad, 1).
    w_last, b_last = params[-1]
    wlast_t = jnp.zeros((out_pad, H), wdt).at[
        :out_dim, : w_last.shape[0]].set(w_last.T.astype(wdt))
    blast = jnp.zeros((out_pad, 1), jnp.float32).at[:out_dim, 0].set(
        b_last.reshape(-1).astype(jnp.float32))

    return w1p, wmid, b_hidden, wlast_t, blast, in_dim, out_dim, out_pad, num_mid


def mlp_dict_forward(x, params, output_keys=("T",), tm=None, use_bf16=False):
    """Runs the Pallas MLP kernel and packages the result as a dict.

    x:       (batch, input_dim) float32
    params:  list of (W, b) with W: (in, out), b: (1, out)
    tm:      batch tile (rows per grid step); default picked by _choose_tm
    use_bf16: cast MXU inputs to bf16 (f32 accumulation / bias / ReLU)
    """
    batch, in_dim = x.shape
    (w1p, wmid, b_hidden, wlast_t, blast,
     in_dim_p, out_dim, out_pad, num_mid) = pack_params(params, use_bf16)
    assert in_dim == in_dim_p, "input feature dim mismatch with params"
    num_hidden = len(params) - 1

    if tm is None:
        tm = _choose_tm(batch)
    assert tm == batch or tm % LANES == 0, (
        "tm must equal batch or be a multiple of 128 (batch lies on output lanes)")
    grid = (pl.cdiv(batch, tm),)        # ragged tail handled by clipped edge block

    layer_dims = [in_dim] + [w.shape[1] for (w, _) in params]
    flops = 2 * batch * sum(layer_dims[i] * layer_dims[i + 1]
                            for i in range(len(layer_dims) - 1))
    param_bytes = sum(w.size * 4 + b.size * 4 for (w, b) in params)
    bytes_accessed = (x.size * x.dtype.itemsize + param_bytes
                      + batch * out_pad * 4)

    kernel = make_mlp_kernel(num_mid, use_bf16)

    out_t = pl.pallas_call(
        kernel,
        out_shape=jax.ShapeDtypeStruct((out_pad, batch), jnp.float32),
        grid=grid,
        in_specs=[
            pl.BlockSpec((tm, in_dim), lambda i: (i, 0)),                 # x: batch-tiled
            pl.BlockSpec((in_dim, H), lambda i: (0, 0)),                  # W1: resident
            pl.BlockSpec((max(num_mid, 1), H, H), lambda i: (0, 0, 0)),   # mid W slab
            pl.BlockSpec((num_hidden, H), lambda i: (0, 0)),              # hidden biases
            pl.BlockSpec((out_pad, H), lambda i: (0, 0)),                 # W_last^T
            pl.BlockSpec((out_pad, 1), lambda i: (0, 0)),                 # b_last
        ],
        out_specs=pl.BlockSpec((out_pad, tm), lambda i: (0, i)),          # minimal slab
        compiler_params=pltpu.CompilerParams(
            dimension_semantics=("parallel",)),
        cost_estimate=pl.CostEstimate(
            flops=flops, transcendentals=0, bytes_accessed=bytes_accessed),
    )(x, w1p, wmid, b_hidden, wlast_t, blast)

    y = out_t[:out_dim].T               # tiny (out_dim, batch) -> (batch, out_dim)
    # Forward returns a dict mapping every output key to the same tensor.
    return {key: y for key in output_keys}


def init_params(key, input_dim, hidden_layers, output_dim):
    """Deterministic parameter init (PyTorch-like uniform fan-in scaling)."""
    dims = [input_dim] + list(hidden_layers) + [output_dim]
    params = []
    for i in range(len(dims) - 1):
        fan_in, fan_out = dims[i], dims[i + 1]
        key, kw, kb = jax.random.split(key, 3)
        bound = 1.0 / jnp.sqrt(fan_in)
        w = jax.random.uniform(kw, (fan_in, fan_out), jnp.float32,
                               minval=-bound, maxval=bound)
        b = jax.random.uniform(kb, (1, fan_out), jnp.float32,
                               minval=-bound, maxval=bound)
        params.append((w, b))
    return params


def reference_forward(x, params):
    """Pure-JAX reference matching the PyTorch forward semantics."""
    h = x
    n = len(params)
    for i, (w, b) in enumerate(params):
        h = h @ w + b
        if i < n - 1:
            h = jnp.maximum(h, 0.0)
    return h


if __name__ == "__main__":
    key = jax.random.PRNGKey(0)

    input_dim = 16            # input_shape = (16,)
    hidden_layers = [128, 64, 32]
    output_dim = 8            # output_shape = (8,)
    output_keys = ("T",)

    key, kparams = jax.random.split(key)
    params = init_params(kparams, input_dim, hidden_layers, output_dim)

    fwd = jax.jit(mlp_dict_forward,
                  static_argnames=("output_keys", "tm", "use_bf16"))

    # Case 1: exact f32 path; batch splits into two lane-aligned tiles (grid=(2,)).
    key, kx = jax.random.split(key)
    x = jax.random.normal(kx, (256, input_dim), jnp.float32)
    out = fwd(x, params, output_keys=output_keys)
    out = jax.tree_util.tree_map(jax.block_until_ready, out)
    ref = reference_forward(x, params)
    for k in output_keys:
        assert out[k].shape == (256, output_dim)
        assert jnp.allclose(out[k], ref, atol=1e-4, rtol=1e-4), f"f32 mismatch for {k}"

    # Case 2: ragged batch (not a multiple of the 128-row tile) -> handled by the
    # cdiv grid + clipped boundary store, no wrapper-side padding pass over x.
    key, kx2 = jax.random.split(key)
    xr = jax.random.normal(kx2, (200, input_dim), jnp.float32)
    out_r = fwd(xr, params, output_keys=output_keys)
    out_r = jax.tree_util.tree_map(jax.block_until_ready, out_r)
    ref_r = reference_forward(xr, params)
    assert out_r["T"].shape == (200, output_dim)
    assert jnp.allclose(out_r["T"], ref_r, atol=1e-4, rtol=1e-4), "ragged-batch mismatch"

    # Case 3: bf16 MXU inputs (f32 accumulation) -- looser tolerance by design.
    out_bf = fwd(x, params, output_keys=output_keys, use_bf16=True)
    out_bf = jax.tree_util.tree_map(jax.block_until_ready, out_bf)
    assert jnp.allclose(out_bf["T"], ref, atol=0.1, rtol=0.1), "bf16 mismatch"

    print("KERNEL_OK")
</pallas_src>

<mosaic_0001>
module attributes {stable_mosaic.version = 11 : i64} {
  func.func @kernel(%arg0: i32, %arg1: memref<128x16xf32, #tpu.memory_space<vmem>>, %arg2: memref<16x128xf32, #tpu.memory_space<vmem>>, %arg3: memref<2x128x128xf32, #tpu.memory_space<vmem>>, %arg4: memref<3x128xf32, #tpu.memory_space<vmem>>, %arg5: memref<8x128xf32, #tpu.memory_space<vmem>>, %arg6: memref<8x1xf32, #tpu.memory_space<vmem>>, %arg7: memref<8x128xf32, #tpu.memory_space<vmem>>) attributes {dimension_semantics = [#tpu.dimension_semantics<parallel>], iteration_bounds = array<i64: 2>, scalar_prefetch = 0 : i64, scratch_operands = 0 : i64, tpu.core_type = #tpu.core_type<tc>, window_params = [{transform_indices = @transform_0, window_bounds = array<i64: 128, 16>}, {pipeline_mode = #tpu.pipeline_mode<synchronous>, transform_indices = @transform_1, window_bounds = array<i64: 16, 128>}, {pipeline_mode = #tpu.pipeline_mode<synchronous>, transform_indices = @transform_2, window_bounds = array<i64: 2, 128, 128>}, {pipeline_mode = #tpu.pipeline_mode<synchronous>, transform_indices = @transform_3, window_bounds = array<i64: 3, 128>}, {pipeline_mode = #tpu.pipeline_mode<synchronous>, transform_indices = @transform_4, window_bounds = array<i64: 8, 128>}, {pipeline_mode = #tpu.pipeline_mode<synchronous>, transform_indices = @transform_5, window_bounds = array<i64: 8, 1>}, {transform_indices = @transform_6, window_bounds = array<i64: 8, 128>}]} {
    %c0 = arith.constant 0 : index
    %c0_0 = arith.constant 0 : index
    %0 = vector.load %arg1[%c0, %c0_0] : memref<128x16xf32, #tpu.memory_space<vmem>>, vector<128x16xf32>
    %c0_1 = arith.constant 0 : index
    %c0_2 = arith.constant 0 : index
    %1 = vector.load %arg2[%c0_1, %c0_2] : memref<16x128xf32, #tpu.memory_space<vmem>>, vector<16x128xf32>
    %cst = arith.constant dense<0.000000e+00> : vector<128x128xf32>
    %2 = tpu.matmul %0, %1, %cst {dimension_numbers = #tpu.dot_dimension_numbers<[1], [0], [0], [1], [0, 0, 1, 1], [], []>} : vector<128x16xf32>, vector<16x128xf32>, vector<128x128xf32> -> vector<128x128xf32>
    %c0_3 = arith.constant 0 : index
    %c0_4 = arith.constant 0 : index
    %3 = vector.load %arg4[%c0_3, %c0_4] : memref<3x128xf32, #tpu.memory_space<vmem>>, vector<1x128xf32>
    %4 = vector.broadcast %3 : vector<1x128xf32> to vector<128x128xf32>
    %5 = arith.addf %2, %4 : vector<128x128xf32>
    %cst_5 = arith.constant 0.000000e+00 : f32
    %6 = vector.broadcast %cst_5 : f32 to vector<128x128xf32>
    %7 = arith.maximumf %5, %6 : vector<128x128xf32>
    %c0_6 = arith.constant 0 : index
    %c0_7 = arith.constant 0 : index
    %c0_8 = arith.constant 0 : index
    %8 = vector.load %arg3[%c0_6, %c0_7, %c0_8] : memref<2x128x128xf32, #tpu.memory_space<vmem>>, vector<1x128x128xf32>
    %9 = vector.shape_cast %8 : vector<1x128x128xf32> to vector<128x128xf32>
    %cst_9 = arith.constant dense<0.000000e+00> : vector<128x128xf32>
    %10 = tpu.matmul %7, %9, %cst_9 {dimension_numbers = #tpu.dot_dimension_numbers<[1], [0], [0], [1], [0, 0, 1, 1], [], []>} : vector<128x128xf32>, vector<128x128xf32>, vector<128x128xf32> -> vector<128x128xf32>
    %c1 = arith.constant 1 : index
    %c0_10 = arith.constant 0 : index
    %11 = vector.load %arg4[%c1, %c0_10] : memref<3x128xf32, #tpu.memory_space<vmem>>, vector<1x128xf32>
    %12 = vector.broadcast %11 : vector<1x128xf32> to vector<128x128xf32>
    %13 = arith.addf %10, %12 : vector<128x128xf32>
    %cst_11 = arith.constant 0.000000e+00 : f32
    %14 = vector.broadcast %cst_11 : f32 to vector<128x128xf32>
    %15 = arith.maximumf %13, %14 : vector<128x128xf32>
    %c1_12 = arith.constant 1 : index
    %c0_13 = arith.constant 0 : index
    %c0_14 = arith.constant 0 : index
    %16 = vector.load %arg3[%c1_12, %c0_13, %c0_14] : memref<2x128x128xf32, #tpu.memory_space<vmem>>, vector<1x128x128xf32>
    %17 = vector.shape_cast %16 : vector<1x128x128xf32> to vector<128x128xf32>
    %cst_15 = arith.constant dense<0.000000e+00> : vector<128x128xf32>
    %18 = tpu.matmul %15, %17, %cst_15 {dimension_numbers = #tpu.dot_dimension_numbers<[1], [0], [0], [1], [0, 0, 1, 1], [], []>} : vector<128x128xf32>, vector<128x128xf32>, vector<128x128xf32> -> vector<128x128xf32>
    %c2 = arith.constant 2 : index
    %c0_16 = arith.constant 0 : index
    %19 = vector.load %arg4[%c2, %c0_16] : memref<3x128xf32, #tpu.memory_space<vmem>>, vector<1x128xf32>
    %20 = vector.broadcast %19 : vector<1x128xf32> to vector<128x128xf32>
    %21 = arith.addf %18, %20 : vector<128x128xf32>
    %cst_17 = arith.constant 0.000000e+00 : f32
    %22 = vector.broadcast %cst_17 : f32 to vector<128x128xf32>
    %23 = arith.maximumf %21, %22 : vector<128x128xf32>
    %c0_18 = arith.constant 0 : index
    %c0_19 = arith.constant 0 : index
    %24 = vector.load %arg5[%c0_18, %c0_19] : memref<8x128xf32, #tpu.memory_space<vmem>>, vector<8x128xf32>
    %cst_20 = arith.constant dense<0.000000e+00> : vector<8x128xf32>
    %25 = tpu.matmul %24, %23, %cst_20 {dimension_numbers = #tpu.dot_dimension_numbers<[1], [1], [0], [0], [0, 0, 1, 0], [], []>} : vector<8x128xf32>, vector<128x128xf32>, vector<8x128xf32> -> vector<8x128xf32>
    %c0_21 = arith.constant 0 : index
    %c0_22 = arith.constant 0 : index
    %26 = vector.load %arg6[%c0_21, %c0_22] : memref<8x1xf32, #tpu.memory_space<vmem>>, vector<8x1xf32>
    %27 = vector.broadcast %26 : vector<8x1xf32> to vector<8x128xf32>
    %28 = arith.addf %25, %27 : vector<8x128xf32>
    %c0_23 = arith.constant 0 : index
    %c0_24 = arith.constant 0 : index
    %29 = vector.load %arg7[%c0_23, %c0_24] : memref<8x128xf32, #tpu.memory_space<vmem>>, vector<8x128xf32>
    tpu.vector_store %arg7[%c0_23, %c0_24], %28 {strides = array<i32>} : memref<8x128xf32, #tpu.memory_space<vmem>>, vector<8x128xf32>,
    return
  }
  func.func @transform_0(%arg0: i32) -> (i32, i32) {
    %c0_i32 = arith.constant 0 : i32
    %c0_i32_0 = arith.constant 0 : i32
    return %arg0, %c0_i32 : i32, i32
  }
  func.func @transform_1(%arg0: i32) -> (i32, i32) {
    %c0_i32 = arith.constant 0 : i32
    %c0_i32_0 = arith.constant 0 : i32
    %c0_i32_1 = arith.constant 0 : i32
    return %c0_i32, %c0_i32_0 : i32, i32
  }
  func.func @transform_2(%arg0: i32) -> (i32, i32, i32) {
    %c0_i32 = arith.constant 0 : i32
    %c0_i32_0 = arith.constant 0 : i32
    %c0_i32_1 = arith.constant 0 : i32
    %c0_i32_2 = arith.constant 0 : i32
    return %c0_i32, %c0_i32_0, %c0_i32_1 : i32, i32, i32
  }
  func.func @transform_3(%arg0: i32) -> (i32, i32) {
    %c0_i32 = arith.constant 0 : i32
    %c0_i32_0 = arith.constant 0 : i32
    %c0_i32_1 = arith.constant 0 : i32
    return %c0_i32, %c0_i32_0 : i32, i32
  }
  func.func @transform_4(%arg0: i32) -> (i32, i32) {
    %c0_i32 = arith.constant 0 : i32
    %c0_i32_0 = arith.constant 0 : i32
    %c0_i32_1 = arith.constant 0 : i32
    return %c0_i32, %c0_i32_0 : i32, i32
  }
  func.func @transform_5(%arg0: i32) -> (i32, i32) {
    %c0_i32 = arith.constant 0 : i32
    %c0_i32_0 = arith.constant 0 : i32
    %c0_i32_1 = arith.constant 0 : i32
    return %c0_i32, %c0_i32_0 : i32, i32
  }
  func.func @transform_6(%arg0: i32) -> (i32, i32) {
    %c0_i32 = arith.constant 0 : i32
    %c0_i32_0 = arith.constant 0 : i32
    return %c0_i32, %arg0 : i32, i32
  }
}

</mosaic_0001>

<bundles_post_ra>
// kernel: mlp_dict_forward.1
= control target key start
LH: loop header
LB: loop body
LE: loop exit
PB: predicated region body
PF: predicated region fallthrough
CT: control target
= control target key end

     0   :  { %11 = vsyncpa [#allocation3], 0  ;;  %s1819_s0 = inlined_call_operand.vmem [shape: f32[256,16], index: 0, kind: input, shape index: {}]   ;;  %s1820_s1 = inlined_call_operand.vmem [shape: f32[16,128], index: 1, kind: input, shape index: {}]   ;;  %s1821_s2 = inlined_call_operand.vmem [shape: f32[2,128,128], index: 2, kind: input, shape index: {}]   ;;  %s1822_s3 = inlined_call_operand.vmem [shape: f32[3,128], index: 3, kind: input, shape index: {}]   ;;  %s1823_s4 = inlined_call_operand.vmem [shape: f32[8,128], index: 4, kind: input, shape index: {}]   ;;  %s1824_s5 = inlined_call_operand.vmem [shape: f32[8,1], index: 5, kind: input, shape index: {}]   ;;  %s1825_s6 = inlined_call_operand.hbm [shape: f32[8,256], index: 6, kind: output, shape index: {}]  }
   0x1   :  { %13 = vsyncpa [#allocation3 + $0x1], 0  ;;  %s1561_s21 = smov 0   ;;  %s1563_s22 = smov 0  }
   0x2   :  { %s1565_s23 = smov 0   ;;  %s1567_s24 = smov 0  }
   0x3 LB: > { %s1582_s25 = sadd.s32 4294967295, %s1519_s24   ;;  %s1001_s26 = sadd.s32 4294967294, %s1519_s24   ;;  %s1519_s24 = sphi %s1567_s24, %s1831_s24   ;;  %s1515_s23 = sphi %s1565_s23, %s1830_s23   ;;  %s1511_s22 = sphi %s1563_s22, %s1829_s22   ;;  %s1507_s21 = sphi %s1561_s21, %s1828_s21  }
   0x4   : > { %s1586_s27 = sadd.s32 1, %s1519_s24   ;;  %s157_s28 = sadd.s32 1, %s1515_s23 }
   0x5   : > { %s154_s29 = ssub.s32 %s1519_s24, %s1586_s27  ;;  %p167_p0 = scmp.ne.s32.totalorder %s1515_s23, %s1511_s22 }
   0x6   : > { %p155_p1 = scmp.eq.s32.totalorder %s154_s29, 0  ;;  %p168_p2 = scmp.eq.s32.totalorder %s1582_s25, 1 }
   0x7   : > { %p173_p3 = scmp.ne.s32.totalorder %s1511_s22, %s1507_s21  ;;  %p174_p4 = scmp.eq.s32.totalorder %s1001_s26, 1 }
   0x8   : > { %s1597_s30 = scalar_select %p155_p1, %s1515_s23, %s157_s28  }
   0x9   : > { %p1599_p5 = por %p168_p2, %p167_p0  ;;  %p1603_p6 = por %p174_p4, %p173_p3 }
   0xa   : > { %p1004_p7 = scmp.ge.s32.totalorder %s1519_s24, 1  ;;  %p216_p8 = scmp.lt.s32.totalorder %s1519_s24, 3 }
   0xc   : > { %p217_p9 = pnand %p1004_p7, %p216_p8 }
   0xd   : > { %v268_v0 = vld [vmem:[%s1820_s1] sm:$0xff] (!%p217_p9)  ;;  %v269_v1 = vld [vmem:[%s1820_s1 + $0x8] sm:$0xff] (!%p217_p9)  ;;  %s1006_s13 = sshll.u32 (!%p217_p9), %s1582_s25, 4  ;;  %v487_v5 = vld [vmem:[%s1821_s2 + $0x10] sm:$0xff] (!%p217_p9)  ;;  %vm275_vm0 = vcmask (!%p217_p9), 130048   ;;  %vm1522_vm1 = vmmov (!%p217_p9), 0  }
   0xe   : > { %220 = sbr.rel (%p217_p9) target bundleno = 972 (0x3cc), region = 44  ;;  %v485_v2 = vld [vmem:[%s1821_s2] sm:$0xff] (!%p217_p9)  ;;  %v1321_v3 = vpack.c.bf16 (!%p217_p9), %v269_v1, %v268_v0  ;;  %p247_p10 = scmp.lt.s32.totalorder (!%p217_p9), %s1006_s13, 31  ;;  %v486_v4 = vld [vmem:[%s1821_s2 + $0x8] sm:$0xff] (!%p217_p9)  ;;  %v488_v6 = vld [vmem:[%s1821_s2 + $0x18] sm:$0xff] (!%p217_p9) }
   0xf   : > { %v1325_v7 = vpack.c.bf16 (!%p217_p9), %v486_v4, %v485_v2  ;;  %v1329_v8 = vpack.c.bf16 (!%p217_p9), %v488_v6, %v487_v5  ;;  %v489_v9 = vld [vmem:[%s1821_s2 + $0x20] sm:$0xff] (!%p217_p9)  ;;  %v490_v10 = vld [vmem:[%s1821_s2 + $0x28] sm:$0xff] (!%p217_p9)  ;;  %v491_v12 = vld [vmem:[%s1821_s2 + $0x30] sm:$0xff] (!%p217_p9)  ;;  %s1044_s20 = sshll.u32 (!%p217_p9), %s1582_s25, 7  ;;  %s1525_s25 = smov (!%p217_p9), [#allocation2]  }
  0x10   : > { %1322 = vmatprep.subr.bf16.mxu0 (!%p217_p9), %v1321_v3  ;;  %v1333_v11 = vpack.c.bf16 (!%p217_p9), %v490_v10, %v489_v9  ;;  %v492_v13 = vld [vmem:[%s1821_s2 + $0x38] sm:$0xff] (!%p217_p9)  ;;  %v493_v20 = vld [vmem:[%s1821_s2 + $0x40] sm:$0xff] (!%p217_p9)  ;;  %v494_v21 = vld [vmem:[%s1821_s2 + $0x48] sm:$0xff] (!%p217_p9)  ;;  %s1461_s12 = sshll.u32 (!%p217_p9), %s1525_s25, 4  ;;  %s1462_s12 = int_to_ptr.vmem [resolvable:$false] %s1461_s12 }
  0x11   : > { %1324 = vmatpush3.bf16.msra.mxu0 (!%p217_p9), %v1321_v3  ;;  %1326 = vmatprep.subr.bf16.mxu1 (!%p217_p9), %v1325_v7  ;;  %v1337_v18 = vpack.c.bf16 (!%p217_p9), %v492_v13, %v491_v12  ;;  %v1341_v23 = vpack.c.bf16 (!%p217_p9), %v494_v21, %v493_v20  ;;  %v495_v25 = vld [vmem:[%s1821_s2 + $0x50] sm:$0xff] (!%p217_p9)  ;;  %v496_v26 = vld [vmem:[%s1821_s2 + $0x58] sm:$0xff] (!%p217_p9)  ;;  %v497_v30 = vld [vmem:[%s1821_s2 + $0x60] sm:$0xff] (!%p217_p9)  ;;  %s1463_s14 = scalar_lea.vmem (!%p217_p9), %s1462_s12, 256 }
  0x12   : > { %1328 = vmatpush3.bf16.msra.mxu1 (!%p217_p9), %v1325_v7  ;;  %v1345_v28 = vpack.c.bf16 (!%p217_p9), %v496_v26, %v495_v25  ;;  %v498_v31 = vld [vmem:[%s1821_s2 + $0x68] sm:$0xff] (!%p217_p9)  ;;  %v499_v40 = vld [vmem:[%s1821_s2 + $0x70] sm:$0xff] (!%p217_p9)  ;;  %v500_v41 = vld [vmem:[%s1821_s2 + $0x78] sm:$0xff] (!%p217_p9) }
  0x13   : > { %1330 = vmatprep.subr.bf16.mxu1 (!%p217_p9), %v1329_v8  ;;  %v1349_v33 = vpack.c.bf16 (!%p217_p9), %v498_v31, %v497_v30  ;;  %v1353_v42 = vpack.c.bf16 (!%p217_p9), %v500_v41, %v499_v40  ;;  %v1026_v43 = vld [vmem:[%s1821_s2 + $0x80] sm:$0xff] (!%p217_p9)  ;;  %v1027_v44 = vld [vmem:[%s1821_s2 + $0x88] sm:$0xff] (!%p217_p9)  ;;  %v1028_v45 = vld [vmem:[%s1821_s2 + $0x90] sm:$0xff] (!%p217_p9) }
  0x14   : > { %v1357_v46 = vpack.c.bf16 (!%p217_p9), %v1027_v44, %v1026_v43  ;;  %v1029_v47 = vld [vmem:[%s1821_s2 + $0x98] sm:$0xff] (!%p217_p9)  ;;  %v1030_v49 = vld [vmem:[%s1821_s2 + $0xa0] sm:$0xff] (!%p217_p9)  ;;  %v1031_v50 = vld [vmem:[%s1821_s2 + $0xa8] sm:$0xff] (!%p217_p9) }
  0x15   : > { %s1833_s13 = smov (!%p247_p10, %s1006_s13), 31  ;;  %v1361_v48 = vpack.c.bf16 %v1029_v47, %v1028_v45  ;;  %v1365_v51 = vpack.c.bf16 %v1031_v50, %v1030_v49  ;;  %v1032_v52 = vld [vmem:[%s1821_s2 + $0xb0] sm:$0xff]  ;;  %v1033_v53 = vld [vmem:[%s1821_s2 + $0xb8] sm:$0xff]  ;;  %v1034_v55 = vld [vmem:[%s1821_s2 + $0xc0] sm:$0xff] }
  0x16   : > { %s1007_s11 = sshll.u32 %s1833_s13, 3  ;;  %1332 = vmatpush3.bf16.msra.mxu1 %v1329_v8  ;;  %1358 = vmatprep.subr.bf16.mxu0 %v1357_v46  ;;  %v1369_v54 = vpack.c.bf16 %v1033_v53, %v1032_v52  ;;  %v1035_v56 = vld [vmem:[%s1821_s2 + $0xc8] sm:$0xff]  ;;  %v1036_v58 = vld [vmem:[%s1821_s2 + $0xd0] sm:$0xff]  ;;  %v1037_v59 = vld [vmem:[%s1821_s2 + $0xd8] sm:$0xff]  ;;  %s243_s13 = sand.u32 1, %s1511_s22  }
  0x17   : > { %s1637_s15 = scalar_lea.vmem %s1819_s0, %s1007_s11  ;;  %1334 = vmatprep.subr.bf16.mxu1 %v1333_v11  ;;  %v1373_v57 = vpack.c.bf16 %v1035_v56, %v1034_v55  ;;  %v1377_v60 = vpack.c.bf16 %v1037_v59, %v1036_v58  ;;  %v1038_v61 = vld [vmem:[%s1821_s2 + $0xe0] sm:$0xff]  ;;  %v1039_v62 = vld [vmem:[%s1821_s2 + $0xe8] sm:$0xff]  ;;  %v1040_v49 = vld [vmem:[%s1821_s2 + $0xf0] sm:$0xff]  ;;  %s1005_s19 = sshll.u32 %s243_s13, 3 }
  0x18   : > { %v252_v14 = vld [vmem:[%s1637_s15] sm:$0xff]  ;;  %v253_v15 = vld [vmem:[%s1637_s15 + $0x8] sm:$0xff]  ;;  %v254_v16 = vld [vmem:[%s1637_s15 + $0x10] sm:$0xff]  ;;  %v1381_v63 = vpack.c.bf16 %v1039_v62, %v1038_v61  ;;  %s245_s26 = scalar_lea.vmem [#allocation2], %s1005_s19  ;;  %s929_s10 = scalar_lea.sflag [#allocation3], %s243_s13 }
  0x19   : > { %1150 = vmatprep.mubr.msk.f32.mxu0 %vm275_vm0, %v252_v14  ;;  %v255_v17 = vld [vmem:[%s1637_s15 + $0x18] sm:$0xff]  ;;  %v256_v19 = vld [vmem:[%s1637_s15 + $0x20] sm:$0xff]  ;;  %v257_v22 = vld [vmem:[%s1637_s15 + $0x28] sm:$0xff]  ;;  %s942_s28 = sshll.u32 %s245_s26, 4  ;;  %s1779_s28 = int_to_ptr.vmem [resolvable:$true] %s942_s28 }
  0x1a   : > { %1151 = vmatmul.mubr.msk.f32.vlgmr.msra.gmra.mrb[0].mxu0 %vm275_vm0, %v253_v15  ;;  %1336 = vmatpush3.bf16.msra.mxu1 %v1333_v11  ;;  %v258_v24 = vld [vmem:[%s1637_s15 + $0x30] sm:$0xff]  ;;  %v259_v27 = vld [vmem:[%s1637_s15 + $0x38] sm:$0xff]  ;;  %v260_v29 = vld [vmem:[%s1637_s15 + $0x40] sm:$0xff]  ;;  %s1457_s11 = scalar_lea.vmem %s1779_s28, 128  ;;  %p1464_p0 = scmp.lt.s32.totalorder %s1779_s28, %s1462_s12 }
  0x1b   : > { %1153 = vmatprep.mubr.msk.f32.mxu0 %vm275_vm0, %v254_v16  ;;  %1338 = vmatprep.subr.bf16.mxu1 %v1337_v18  ;;  %v261_v32 = vld [vmem:[%s1637_s15 + $0x48] sm:$0xff]  ;;  %v262_v34 = vld [vmem:[%s1637_s15 + $0x50] sm:$0xff]  ;;  %v263_v35 = vld [vmem:[%s1637_s15 + $0x58] sm:$0xff]  ;;  %p1458_p11 = scmp.ne.s32.totalorder %s1779_s28, %s1457_s11  ;;  %p1465_p1 = scmp.lt.s32.totalorder %s1463_s14, %s1457_s11 }
  0x1c   : > { %v264_v36 = vld [vmem:[%s1637_s15 + $0x60] sm:$0xff]  ;;  %v265_v37 = vld [vmem:[%s1637_s15 + $0x68] sm:$0xff]  ;;  %v266_v38 = vld [vmem:[%s1637_s15 + $0x70] sm:$0xff]  ;;  %1360 = vmatpush3.bf16.msra.mxu0 %v1357_v46 }
  0x1d   : > { %v267_v39 = vld [vmem:[%s1637_s15 + $0x78] sm:$0xff]  ;;  %1362 = vmatprep.subr.bf16.mxu0 %v1361_v48  ;;  %v1008_v0 = vld [vmem:[%s1822_s3] ss:$0 sm:$0xff]  ;;  %v1025_v52 = vld [vmem:[%s1822_s3 + $0x1] ss:$0 sm:$0xff]  ;;  %s1777_s15 = scalar_lea.hbm %s1825_s6, %s1044_s20  ;;  %p1459_p12 = pnand %p1458_p11, %p1599_p5 }
  0x1e   : > { %1154 = vmatmul.mubr.msk.f32.gmra.mrb[2].mxu0 %vm275_vm0, %v255_v17  ;;  %1340 = vmatpush3.bf16.msra.mxu1 %v1337_v18  ;;  %v1041_v50 = vld [vmem:[%s1821_s2 + $0xf8] sm:$0xff]  ;;  %p1466_p2 = por %p1465_p1, %p1464_p0 }
  0x1f   : > { %1156 = vmatprep.mubr.msk.f32.mxu0 %vm275_vm0, %v256_v19  ;;  %1342 = vmatprep.subr.bf16.mxu1 %v1341_v23  ;;  %p1460_p13 = pneg %p1459_p12 }
  0x20   : > { %1364 = vmatpush3.bf16.msra.mxu0 %v1361_v48 }
  0x21   : > { %1366 = vmatprep.subr.bf16.mxu0 %v1365_v51  ;;  %p1467_p3 = pnand %p1466_p2, %p1460_p13 }
  0x22   : > { %1157 = vmatmul.mubr.msk.f32.gmra.mrb[4].mxu0 %vm275_vm0, %v257_v22  ;;  %1344 = vmatpush3.bf16.msra.mxu1 %v1341_v23 }
  0x23   : > { %1159 = vmatprep.mubr.msk.f32.mxu0 %vm275_vm0, %v258_v24  ;;  %1346 = vmatprep.subr.bf16.mxu1 %v1345_v28 }
  0x24   : > { %1368 = vmatpush3.bf16.msra.mxu0 %v1365_v51  ;;  %v1385_v51 = vpack.c.bf16 %v1041_v50, %v1040_v49 }
  0x25   : > { %1370 = vmatprep.subr.bf16.mxu0 %v1369_v54 }
  0x26   : > { %1160 = vmatmul.mubr.msk.f32.gmra.mrb[6].mxu0 %vm275_vm0, %v259_v27  ;;  %1348 = vmatpush3.bf16.msra.mxu1 %v1345_v28 }
  0x27   : > { %1162 = vmatprep.mubr.msk.f32.mxu0 %vm275_vm0, %v260_v29  ;;  %1350 = vmatprep.subr.bf16.mxu1 %v1349_v33 }
  0x28   : > { %1372 = vmatpush3.bf16.msra.mxu0 %v1369_v54 }
  0x29   : > { %1374 = vmatprep.subr.bf16.mxu0 %v1373_v57 }
  0x2a   : > { %1163 = vmatmul.mubr.msk.f32.gmra.mrb[8].mxu0 %vm275_vm0, %v261_v32  ;;  %1352 = vmatpush3.bf16.msra.mxu1 %v1349_v33 }
  0x2b   : > { %1165 = vmatprep.mubr.msk.f32.mxu0 %vm275_vm0, %v262_v34  ;;  %1354 = vmatprep.subr.bf16.mxu1 %v1353_v42 }
  0x2c   : > { %1376 = vmatpush3.bf16.msra.mxu0 %v1373_v57 }
  0x2d   : > { %1378 = vmatprep.subr.bf16.mxu0 %v1377_v60 }
  0x2e   : > { %1166 = vmatmul.mubr.msk.f32.gmra.mrb[10].mxu0 %vm275_vm0, %v263_v35  ;;  %1356 = vmatpush3.bf16.msra.mxu1 %v1353_v42 }
  0x2f   : > { %1168 = vmatprep.mubr.msk.f32.mxu0 %vm275_vm0, %v264_v36 }
  0x30   : > { %1380 = vmatpush3.bf16.msra.mxu0 %v1377_v60 }
  0x31   : > { %1382 = vmatprep.subr.bf16.mxu0 %v1381_v63 }
  0x32   : > { %1169 = vmatmul.mubr.msk.f32.gmra.mrb[12].mxu0 %vm275_vm0, %v265_v37 }
  0x33   : > { %1171 = vmatprep.mubr.msk.f32.mxu0 %vm275_vm0, %v266_v38 }
  0x34   : > { %1384 = vmatpush3.bf16.msra.mxu0 %v1381_v63 }
  0x35   : > { %1386 = vmatprep.subr.bf16.mxu0 %v1385_v51 }
  0x36   : > { %1172 = vmatmul.mubr.msk.f32.gmra.mrb[14].mxu0 %vm275_vm0, %v267_v39 }
  0x38   : > { %1388 = vmatpush3.bf16.msra.mxu0 %v1385_v51 }
  0xed   : > { %v1152_v1 = vpop.f32.mrb[0].mxu0 }
  0xee   : > { %v396_v2 = vadd.f32 %v1152_v1, %v1008_v0  ;;  %v390_v3 = vpop.f32.mrb[1].mxu0 }
  0xef   : > { %v391_v4 = vadd.f32 %v1008_v0, %v390_v3 }
  0xf0   : > { %v470_v7 = vmax.f32 %v396_v2, 0.0 }
  0xf1   : > { %v1155_v5 = vpop.f32.mrb[2].mxu0  ;;  %v469_v6 = vmax.f32 %v391_v4, 0.0 }
  0xf2   : > { %v406_v8 = vadd.f32 %v1155_v5, %v1008_v0  ;;  %v400_v9 = vpop.f32.mrb[3].mxu0 }
  0xf3   : > { %v401_v10 = vadd.f32 %v1008_v0, %v400_v9  ;;  %1206 = vmatprep.mubr.f32.mxu1 %v469_v6 }
  0xf4   : > { %v472_v11 = vmax.f32 %v406_v8, 0.0  ;;  %1207 = vmatmul.mubr.f32.vlgmr.msra.gmra.mrb[0].mxu1 %v470_v7 }
  0xf5   : > { %v471_v12 = vmax.f32 %v401_v10, 0.0  ;;  %v1158_v13 = vpop.f32.mrb[4].mxu0 }
  0xf6   : > { %v416_v14 = vadd.f32 %v1158_v13, %v1008_v0  ;;  %v410_v15 = vpop.f32.mrb[5].mxu0 }
  0xf7   : > { %1209 = vmatprep.mubr.f32.mxu1 %v471_v12  ;;  %v411_v16 = vadd.f32 %v1008_v0, %v410_v15 }
  0xf8   : > { %v474_v17 = vmax.f32 %v416_v14, 0.0  ;;  %1210 = vmatmul.mubr.f32.gmra.mrb[2].mxu1 %v472_v11 }
  0xf9   : > { %v473_v18 = vmax.f32 %v411_v16, 0.0  ;;  %v1161_v19 = vpop.f32.mrb[6].mxu0 }
  0xfa   : > { %v426_v20 = vadd.f32 %v1161_v19, %v1008_v0  ;;  %v420_v21 = vpop.f32.mrb[7].mxu0 }
  0xfb   : > { %1212 = vmatprep.mubr.f32.mxu1 %v473_v18  ;;  %v421_v22 = vadd.f32 %v1008_v0, %v420_v21 }
  0xfc   : > { %1213 = vmatmul.mubr.f32.gmra.mrb[4].mxu1 %v474_v17  ;;  %v476_v23 = vmax.f32 %v426_v20, 0.0 }
  0xfd   : > { %v475_v24 = vmax.f32 %v421_v22, 0.0  ;;  %v1164_v25 = vpop.f32.mrb[8].mxu0 }
  0xfe   : > { %v436_v26 = vadd.f32 %v1164_v25, %v1008_v0  ;;  %v430_v27 = vpop.f32.mrb[9].mxu0 }
  0xff   : > { %1215 = vmatprep.mubr.f32.mxu1 %v475_v24  ;;  %v431_v28 = vadd.f32 %v1008_v0, %v430_v27 }
 0x100   : > { %1216 = vmatmul.mubr.f32.gmra.mrb[6].mxu1 %v476_v23  ;;  %v478_v29 = vmax.f32 %v436_v26, 0.0 }
 0x101   : > { %v477_v30 = vmax.f32 %v431_v28, 0.0  ;;  %v1167_v31 = vpop.f32.mrb[10].mxu0 }
 0x102   : > { %v446_v32 = vadd.f32 %v1167_v31, %v1008_v0  ;;  %v440_v33 = vpop.f32.mrb[11].mxu0 }
 0x103   : > { %1218 = vmatprep.mubr.f32.mxu1 %v477_v30  ;;  %v441_v34 = vadd.f32 %v1008_v0, %v440_v33 }
 0x104   : > { %1219 = vmatmul.mubr.f32.gmra.mrb[8].mxu1 %v478_v29  ;;  %v480_v35 = vmax.f32 %v446_v32, 0.0 }
 0x105   : > { %v479_v36 = vmax.f32 %v441_v34, 0.0  ;;  %v1170_v37 = vpop.f32.mrb[12].mxu0 }
 0x106   : > { %v456_v38 = vadd.f32 %v1170_v37, %v1008_v0  ;;  %v450_v39 = vpop.f32.mrb[13].mxu0  ;;  %v1521_v37 = vmov 0.0|0.0  }
 0x107   : > { %1221 = vmatprep.mubr.f32.mxu1 %v479_v36  ;;  %v451_v40 = vadd.f32 %v1008_v0, %v450_v39  ;;  %1389 = vmatprep.subr.bf16.mxu1 %v1521_v37  ;;  %v851_v39 = vld [vmem:[%s1824_s5] sm:$0xff] }
 0x108   : > { %1222 = vmatmul.mubr.f32.gmra.mrb[10].mxu1 %v480_v35  ;;  %v482_v41 = vmax.f32 %v456_v38, 0.0  ;;  %v1523_v38 = vmov 0.0  }
 0x109   : > { %v481_v42 = vmax.f32 %v451_v40, 0.0  ;;  %v1173_v43 = vpop.f32.mrb[14].mxu0  ;;  %v1524_v40 = vmov 0  }
 0x10a   : > { %v466_v44 = vadd.f32 %v1173_v43, %v1008_v0  ;;  %v460_v45 = vpop.f32.mrb[15].mxu0  ;;  %1456 = vset.pattern.permute.xlu0 %v1524_v40 }
 0x10b   : > { %1224 = vmatprep.mubr.f32.mxu1 %v481_v42  ;;  %v461_v46 = vadd.f32 %v1008_v0, %v460_v45  ;;  %854 = vperm.xlu0 %1456, %v851_v39  }
 0x10c   : > { %1225 = vmatmul.mubr.f32.gmra.mrb[12].mxu1 %v482_v41  ;;  %v484_v47 = vmax.f32 %v466_v44, 0.0  ;;  %v1042_v41 = vld [vmem:[%s1822_s3 + $0x2] ss:$0 sm:$0xff] }
 0x10d   : > { %v483_v48 = vmax.f32 %v461_v46, 0.0 }
 0x10f   : > { %1227 = vmatprep.mubr.f32.mxu1 %v483_v48 }
 0x110   : > { %1228 = vmatmul.mubr.f32.gmra.mrb[14].mxu1 %v484_v47 }
 0x111   : > { %1318 = vmatprep.mubr.msk.f32.mxu1 %vm1522_vm1, %v1523_v38 }
 0x1c7   : > { %v1208_v53 = vpop.f32.mrb[0].mxu1 }
 0x1c8   : > { %v578_v54 = vadd.f32 %v1208_v53, %v1025_v52  ;;  %v572_v55 = vpop.f32.mrb[1].mxu1 }
 0x1c9   : > { %v573_v56 = vadd.f32 %v1025_v52, %v572_v55 }
 0x1ca   : > { %v652_v59 = vmax.f32 %v578_v54, 0.0 }
 0x1cb   : > { %v651_v57 = vmax.f32 %v573_v56, 0.0  ;;  %v1211_v58 = vpop.f32.mrb[2].mxu1 }
 0x1cc   : > { %v588_v60 = vadd.f32 %v1211_v58, %v1025_v52  ;;  %v582_v61 = vpop.f32.mrb[3].mxu1 }
 0x1cd   : > { %v583_v62 = vadd.f32 %v1025_v52, %v582_v61  ;;  %1262 = vmatprep.mubr.f32.mxu0 %v651_v57 }
 0x1ce   : > { %v654_v63 = vmax.f32 %v588_v60, 0.0  ;;  %1263 = vmatmul.mubr.f32.vlgmr.msra.gmra.mrb[16].mxu0 %v652_v59 }
 0x1cf   : > { %v653_v0 = vmax.f32 %v583_v62, 0.0  ;;  %v1214_v1 = vpop.f32.mrb[4].mxu1 }
 0x1d0   : > { %v598_v2 = vadd.f32 %v1214_v1, %v1025_v52  ;;  %v592_v3 = vpop.f32.mrb[5].mxu1 }
 0x1d1   : > { %1265 = vmatprep.mubr.f32.mxu0 %v653_v0  ;;  %v593_v4 = vadd.f32 %v1025_v52, %v592_v3 }
 0x1d2   : > { %v656_v5 = vmax.f32 %v598_v2, 0.0  ;;  %1266 = vmatmul.mubr.f32.gmra.mrb[18].mxu0 %v654_v63 }
 0x1d3   : > { %v655_v6 = vmax.f32 %v593_v4, 0.0  ;;  %v1217_v7 = vpop.f32.mrb[6].mxu1 }
 0x1d4   : > { %v608_v8 = vadd.f32 %v1217_v7, %v1025_v52  ;;  %v602_v9 = vpop.f32.mrb[7].mxu1 }
 0x1d5   : > { %1268 = vmatprep.mubr.f32.mxu0 %v655_v6  ;;  %v603_v10 = vadd.f32 %v1025_v52, %v602_v9 }
 0x1d6   : > { %1269 = vmatmul.mubr.f32.gmra.mrb[20].mxu0 %v656_v5  ;;  %v658_v11 = vmax.f32 %v608_v8, 0.0 }
 0x1d7   : > { %v657_v12 = vmax.f32 %v603_v10, 0.0  ;;  %v1220_v13 = vpop.f32.mrb[8].mxu1 }
 0x1d8   : > { %v618_v14 = vadd.f32 %v1220_v13, %v1025_v52  ;;  %v612_v15 = vpop.f32.mrb[9].mxu1 }
 0x1d9   : > { %1271 = vmatprep.mubr.f32.mxu0 %v657_v12  ;;  %v613_v16 = vadd.f32 %v1025_v52, %v612_v15 }
 0x1da   : > { %1272 = vmatmul.mubr.f32.gmra.mrb[22].mxu0 %v658_v11  ;;  %v660_v17 = vmax.f32 %v618_v14, 0.0 }
 0x1db   : > { %v659_v18 = vmax.f32 %v613_v16, 0.0  ;;  %v1223_v19 = vpop.f32.mrb[10].mxu1 }
 0x1dc   : > { %v628_v20 = vadd.f32 %v1223_v19, %v1025_v52  ;;  %v622_v21 = vpop.f32.mrb[11].mxu1 }
 0x1dd   : > { %1274 = vmatprep.mubr.f32.mxu0 %v659_v18  ;;  %v623_v22 = vadd.f32 %v1025_v52, %v622_v21 }
 0x1de   : > { %1275 = vmatmul.mubr.f32.gmra.mrb[24].mxu0 %v660_v17  ;;  %v662_v23 = vmax.f32 %v628_v20, 0.0 }
 0x1df   : > { %v661_v24 = vmax.f32 %v623_v22, 0.0  ;;  %v1226_v25 = vpop.f32.mrb[12].mxu1 }
 0x1e0   : > { %v638_v26 = vadd.f32 %v1226_v25, %v1025_v52  ;;  %v632_v27 = vpop.f32.mrb[13].mxu1 }
 0x1e1   : > { %1277 = vmatprep.mubr.f32.mxu0 %v661_v24  ;;  %v633_v28 = vadd.f32 %v1025_v52, %v632_v27 }
 0x1e2   : > { %1278 = vmatmul.mubr.f32.gmra.mrb[26].mxu0 %v662_v23  ;;  %v664_v29 = vmax.f32 %v638_v26, 0.0 }
 0x1e3   : > { %v663_v30 = vmax.f32 %v633_v28, 0.0  ;;  %v1229_v31 = vpop.f32.mrb[14].mxu1 }
 0x1e4   : > { %v648_v32 = vadd.f32 %v1229_v31, %v1025_v52  ;;  %v642_v33 = vpop.f32.mrb[15].mxu1 }
 0x1e5   : > { %1280 = vmatprep.mubr.f32.mxu0 %v663_v30  ;;  %v643_v34 = vadd.f32 %v1025_v52, %v642_v33 }
 0x1e6   : > { %1281 = vmatmul.mubr.f32.gmra.mrb[28].mxu0 %v664_v29  ;;  %v666_v35 = vmax.f32 %v648_v32, 0.0 }
 0x1e7   : > { %v665_v36 = vmax.f32 %v643_v34, 0.0  ;;  %v850_v34 = vld [vmem:[%s1823_s4] sm:$0xff] }
 0x1e9   : > { %1283 = vmatprep.mubr.f32.mxu0 %v665_v36 }
 0x1ea   : > { %1284 = vmatmul.mubr.f32.gmra.mrb[30].mxu0 %v666_v35  ;;  %v855_v35 = vpop.permute.xlu0 %854 }
 0x2a1   : > { %v1264_v42 = vpop.f32.mrb[16].mxu0 }
 0x2a2   : > { %v761_v43 = vadd.f32 %v1264_v42, %v1042_v41  ;;  %v755_v44 = vpop.f32.mrb[17].mxu0 }
 0x2a3   : > { %v756_v45 = vadd.f32 %v1042_v41, %v755_v44 }
 0x2a4   : > { %v835_v46 = vmax.f32 %v761_v43, 0.0 }
 0x2a5   : > { %v834_v47 = vmax.f32 %v756_v45, 0.0  ;;  %v1267_v48 = vpop.f32.mrb[18].mxu0 }
 0x2a6   : > { %v771_v49 = vadd.f32 %v1267_v48, %v1042_v41  ;;  %v765_v50 = vpop.f32.mrb[19].mxu0 }
 0x2a7   : > { %v1390_v51 = vpack.c.bf16 %v835_v46, %v834_v47  ;;  %v766_v52 = vadd.f32 %v1042_v41, %v765_v50 }
 0x2a8   : > { %v837_v53 = vmax.f32 %v771_v49, 0.0 }
 0x2a9   : > { %v836_v54 = vmax.f32 %v766_v52, 0.0  ;;  %1391 = vmatpush3.bf16.xpose.msra.mxu1 %v1390_v51  ;;  %v1270_v55 = vpop.f32.mrb[20].mxu0 }
 0x2aa   : > { %v781_v56 = vadd.f32 %v1270_v55, %v1042_v41  ;;  %v775_v57 = vpop.f32.mrb[21].mxu0  ;;  %1392 = vmatprep.subr.bf16.mxu1 %v1521_v37 }
 0x2ab   : > { %v1393_v58 = vpack.c.bf16 %v837_v53, %v836_v54  ;;  %v776_v59 = vadd.f32 %v1042_v41, %v775_v57 }
 0x2ac   : > { %v839_v60 = vmax.f32 %v781_v56, 0.0 }
 0x2ad   : > { %v838_v61 = vmax.f32 %v776_v59, 0.0  ;;  %v1273_v62 = vpop.f32.mrb[22].mxu0 }
 0x2ae   : > { %v791_v63 = vadd.f32 %v1273_v62, %v1042_v41  ;;  %v785_v0 = vpop.f32.mrb[23].mxu0 }
 0x2af   : > { %v1396_v1 = vpack.c.bf16 %v839_v60, %v838_v61  ;;  %v786_v2 = vadd.f32 %v1042_v41, %v785_v0 }
 0x2b0   : > { %v841_v3 = vmax.f32 %v791_v63, 0.0 }
 0x2b1   : > { %1394 = vmatpush3.bf16.xpose.msra.mxu1 %v1393_v58  ;;  %v840_v4 = vmax.f32 %v786_v2, 0.0  ;;  %v1276_v5 = vpop.f32.mrb[24].mxu0 }
 0x2b2   : > { %1395 = vmatprep.subr.bf16.mxu1 %v1521_v37  ;;  %v801_v6 = vadd.f32 %v1276_v5, %v1042_v41  ;;  %v795_v7 = vpop.f32.mrb[25].mxu0 }
 0x2b3   : > { %v1399_v8 = vpack.c.bf16 %v841_v3, %v840_v4  ;;  %v796_v9 = vadd.f32 %v1042_v41, %v795_v7 }
 0x2b4   : > { %v843_v10 = vmax.f32 %v801_v6, 0.0 }
 0x2b5   : > { %v842_v11 = vmax.f32 %v796_v9, 0.0  ;;  %v1279_v12 = vpop.f32.mrb[26].mxu0 }
 0x2b6   : > { %v811_v13 = vadd.f32 %v1279_v12, %v1042_v41  ;;  %v805_v14 = vpop.f32.mrb[27].mxu0 }
 0x2b7   : > { %v1402_v15 = vpack.c.bf16 %v843_v10, %v842_v11  ;;  %v806_v16 = vadd.f32 %v1042_v41, %v805_v14 }
 0x2b8   : > { %v845_v17 = vmax.f32 %v811_v13, 0.0 }
 0x2b9   : > { %1397 = vmatpush3.bf16.xpose.msra.mxu1 %v1396_v1  ;;  %v844_v18 = vmax.f32 %v806_v16, 0.0  ;;  %v1282_v19 = vpop.f32.mrb[28].mxu0 }
 0x2ba   : > { %1398 = vmatprep.subr.bf16.mxu1 %v1521_v37  ;;  %v821_v20 = vadd.f32 %v1282_v19, %v1042_v41  ;;  %v815_v21 = vpop.f32.mrb[29].mxu0 }
 0x2bb   : > { %v1405_v22 = vpack.c.bf16 %v845_v17, %v844_v18  ;;  %v816_v23 = vadd.f32 %v1042_v41, %v815_v21 }
 0x2bc   : > { %v847_v24 = vmax.f32 %v821_v20, 0.0 }
 0x2bd   : > { %v846_v25 = vmax.f32 %v816_v23, 0.0  ;;  %v1285_v26 = vpop.f32.mrb[30].mxu0 }
 0x2be   : > { %v831_v27 = vadd.f32 %v1285_v26, %v1042_v41  ;;  %v825_v28 = vpop.f32.mrb[31].mxu0 }
 0x2bf   : > { %v1408_v29 = vpack.c.bf16 %v847_v24, %v846_v25  ;;  %v826_v30 = vadd.f32 %v1042_v41, %v825_v28 }
 0x2c0   : > { %v849_v31 = vmax.f32 %v831_v27, 0.0 }
 0x2c1   : > { %1400 = vmatpush3.bf16.xpose.msra.mxu1 %v1399_v8  ;;  %v848_v32 = vmax.f32 %v826_v30, 0.0 }
 0x2c2   : > { %1401 = vmatprep.subr.bf16.mxu1 %v1521_v37 }
 0x2c3   : > { %v1411_v33 = vpack.c.bf16 %v849_v31, %v848_v32 }
 0x2c9   : > { %1403 = vmatpush3.bf16.xpose.msra.mxu1 %v1402_v15 }
 0x2ca   : > { %1404 = vmatprep.subr.bf16.mxu1 %v1521_v37 }
 0x2d1   : > { %1406 = vmatpush3.bf16.xpose.msra.mxu1 %v1405_v22 }
 0x2d2   : > { %1407 = vmatprep.subr.bf16.mxu1 %v1521_v37 }
 0x2d9   : > { %1409 = vmatpush3.bf16.xpose.msra.mxu1 %v1408_v29 }
 0x2da   : > { %1410 = vmatprep.subr.bf16.mxu1 %v1521_v37 }
 0x2e1   : > { %1412 = vmatpush3.bf16.xpose.msra.mxu1 %v1411_v33 }
 0x2e8   : > { %1319 = vmatmul.mubr.f32.vlgmr.msra.gmra.mrb[16].mxu1 %v850_v34 }
 0x3bb   : > { %v923_v36 = vpop.f32.mrb[16].mxu1 }
 0x3bc   : > { %v924_v38 = vadd.f32 %v923_v36, %v855_v35  ;;  %v1320_v39 = vpop.f32.mrb[17].mxu1 }
 0x3be   : > { %927 = vst [vmem:[%s245_s26] sm:$0xff] %v924_v38 }
 0x3bf   : > { %1470 = shalt.err (!%p1467_p3)
}
 0x3c0   : > { %s1471_s16 = scalar_lea.hbm %s1777_s15, 128  ;;  %s1475_s13 = scalar_lea.hbm %s1825_s6, 256 }
 0x3c1   : > { %p1472_p4 = scmp.ne.s32.totalorder %s1777_s15, %s1471_s16  ;;  %p1476_p9 = scmp.lt.u32.totalorder %s1777_s15, %s1825_s6 }
 0x3c2   : > { %p1477_p10 = scmp.lt.u32.totalorder %s1475_s13, %s1471_s16  ;;  %p1479_p12 = scmp.lt.u32.totalorder %s1471_s16, %s1777_s15 }
 0x3c3   : > { %p1473_p7 = pnand %p1472_p4, %p1599_p5 }
 0x3c4   : > { %p1478_p11 = por %p1477_p10, %p1476_p9 }
 0x3c5   : > { %p1474_p8 = pneg %p1473_p7 }
 0x3c6   : > { %p1480_p13 = por %p1479_p12, %p1478_p11 }
 0x3c8   : > { %p1481_p0 = pnand %p1480_p13, %p1474_p8 }
 0x3ca   : > { %1484 = shalt.err (!%p1481_p0)
}
 0x3cb   : > { %1413 = dma.vmem_to_hbm [thread:$0]  (%p1599_p5), %s1779_s28, 128, %s1777_s15, %s929_s10  }
 0x3cc PF: > { %p1419_p1 = scmp.ge.s32.totalorder %s1519_s24, 2  ;;  %s954_s26 = sand.u32 1, %s1507_s21  }
 0x3cd   : > { %s955_s29 = scalar_lea.sflag [#allocation3], %s954_s26 }
 0x3ce   : > { %p1416_p2 = pnand %p1419_p1, %p1603_p6 }
 0x3d0   : > { %1502 = dma.done.wait (!%p1416_p2), %s955_s29, 128  }
 0x3d1   : > { %1504 = vsyncadd (!%p1416_p2), %s955_s29, 4294967168  ;;  %p16_p3 = scmp.ge.s32.totalorder %s1586_s27, 4   ;;  %s1828_s21 = smov %s1511_s22 }
 0x3d2   : > { %s1829_s22 = smov %s1515_s23  ;;  %s1830_s23 = smov %s1597_s30 }
 0x3d3   : > { %s1831_s24 = smov %s1586_s27  ;;  %18 = sbr.rel (!%p16_p3) target bundleno = 3 (0x3), region = 80 }
 0x3da   :  { %960 = vsyncpa [#allocation3], 1 }
 0x3db   :  { %962 = vsyncpa [#allocation3 + $0x1], 1 }

</bundles_post_ra>
